<compile_context>
chip_gen: v7x
topology: tpu7x:2x2x1
jax: 0.10.0
libtpu: 0.0.40
codegen_flags: <defaults>
</compile_context>

<pallas_src>
import functools

import jax
import jax.numpy as jnp
from jax.experimental import pallas as pl
from jax.experimental.pallas import tpu as pltpu

_LANE = 128
_SUBLANE = 8


def _soft_entropy_block(x_ref, t_ref, *, batch, tile_rows):
    """Per-tile math. Returns (loss_vec tile, masked per-column partial sums)."""
    x = x_ref[...].astype(jnp.float32)   # (TB, C) student logits
    t = t_ref[...].astype(jnp.float32)   # (TB, C) teacher logits

    # Numerically stable log_softmax(x, axis=1).
    x_max = jnp.max(x, axis=1, keepdims=True)
    x_sh = x - x_max
    lse_x = jnp.log(jnp.sum(jnp.exp(x_sh), axis=1, keepdims=True))
    log_probs = x_sh - lse_x

    # Numerically stable softmax(t, axis=1); exact normalization (divide) —
    # the kernel is HBM-bandwidth bound so this is hidden under the DMAs.
    # ".detach()" is a no-op in a forward-only kernel.
    t_max = jnp.max(t, axis=1, keepdims=True)
    t_exp = jnp.exp(t - t_max)
    t_sum = jnp.sum(t_exp, axis=1, keepdims=True)
    probs_t = t_exp / t_sum

    vec = -probs_t * log_probs                                # (TB, C) f32

    # Rows past the logical batch exist only in the ragged last grid step.
    # Their loss_vec rows are discarded by Pallas on writeback, but the
    # partial-sum reduction below must not see that garbage.
    row_ids = pl.program_id(0) * tile_rows + jax.lax.broadcasted_iota(
        jnp.int32, vec.shape, 0)
    vec_valid = jnp.where(row_ids < batch, vec, 0.0)
    col_partial = jnp.sum(vec_valid, axis=0, keepdims=True)   # (1, C) f32
    return vec, col_partial


def _kernel_with_vec(x_ref, t_ref, vec_ref, part_ref, *, batch, tile_rows):
    vec, col_partial = _soft_entropy_block(
        x_ref, t_ref, batch=batch, tile_rows=tile_rows)
    vec_ref[...] = vec.astype(vec_ref.dtype)
    part_ref[...] = col_partial.reshape(part_ref.shape)


def _kernel_loss_only(x_ref, t_ref, part_ref, *, batch, tile_rows):
    _, col_partial = _soft_entropy_block(
        x_ref, t_ref, batch=batch, tile_rows=tile_rows)
    part_ref[...] = col_partial.reshape(part_ref.shape)


def _vmem_capacity_bytes():
    try:
        info = pltpu.get_tpu_info()
        cap = getattr(info, "vmem_capacity_bytes", None)
        if cap:
            return int(cap)
    except Exception:
        pass
    return 64 * 1024 * 1024   # conservative fallback (v7x per-core VMEM)


def soft_entropy_loss(results, results_mean, *, compute_loss_vec=True,
                      vec_dtype=None):
    assert results_mean is not None
    inputs = results["prob"]
    targets = results_mean["prob"]
    assert inputs.shape == targets.shape and inputs.ndim == 2
    B, C = inputs.shape

    vec_dt = jnp.dtype(vec_dtype) if vec_dtype is not None else jnp.dtype(inputs.dtype)
    in_bytes = jnp.dtype(inputs.dtype).itemsize
    vec_bytes = vec_dt.itemsize if compute_loss_vec else 0

    # ---- Chip-aware VMEM budget -> row-tile size --------------------------
    vmem_cap = _vmem_capacity_bytes()                      # 128 MiB v5e/v6e, 64 MiB v7x
    vmem_limit = min(vmem_cap, max(48 * 1024 * 1024, int(vmem_cap * 0.75)))
    vmem_budget = int(vmem_limit * 0.75)

    # Dtype-aware per-row VMEM footprint (lane-padded): double-buffered
    # pipeline buffers for the two inputs (+ vec output when emitted) plus
    # ~4 live f32 intermediates (x, t, exp, log_probs/vec).
    c_lane = pl.cdiv(C, _LANE) * _LANE
    per_row = (2 * 2 * in_bytes + 2 * vec_bytes) * c_lane + 4 * 4 * c_lane
    tb_budget = max(_SUBLANE, (vmem_budget // per_row) // _SUBLANE * _SUBLANE)
    # TODO(synk): for extremely large C a single row-tile may not fit VMEM; a
    # two-pass (online-softmax) class-tiled variant would be needed there.

    # Keep >= 4 grid steps when B allows so both v7x TensorCores get work
    # (grid axis is "parallel"), otherwise take the whole (rounded) batch.
    b_rounded = pl.cdiv(B, _SUBLANE) * _SUBLANE
    MIN_GRID = 4
    if B >= _SUBLANE * MIN_GRID:
        tb_grid_cap = max(_SUBLANE, (B // MIN_GRID) // _SUBLANE * _SUBLANE)
    else:
        tb_grid_cap = b_rounded
    TB = max(_SUBLANE, min(tb_budget, tb_grid_cap, 8192, b_rounded))

    num_tiles = pl.cdiv(B, TB)
    grid = (num_tiles,)

    cost = pl.CostEstimate(
        flops=8 * B * C,
        transcendentals=2 * B * C,
        bytes_accessed=(2 * in_bytes + vec_bytes) * B * C + num_tiles * C * 4,
    )
    params = pltpu.CompilerParams(
        dimension_semantics=("parallel",),
        vmem_limit_bytes=vmem_limit,
    )

    in_specs = [
        pl.BlockSpec((TB, C), lambda i: (i, 0)),
        pl.BlockSpec((TB, C), lambda i: (i, 0)),
    ]
    # Lane-dense per-tile partial column sums (last two block dims == full dims).
    part_shape = jax.ShapeDtypeStruct((num_tiles, 1, C), jnp.float32)
    part_spec = pl.BlockSpec((1, 1, C), lambda i: (i, 0, 0))

    if compute_loss_vec:
        kernel = functools.partial(_kernel_with_vec, batch=B, tile_rows=TB)
        vec, part = pl.pallas_call(
            kernel,
            out_shape=(jax.ShapeDtypeStruct((B, C), vec_dt), part_shape),
            grid=grid,
            in_specs=in_specs,
            out_specs=(pl.BlockSpec((TB, C), lambda i: (i, 0)), part_spec),
            compiler_params=params,
            cost_estimate=cost,
        )(inputs, targets)
        loss = jnp.sum(part) / B          # tiny final reduce; fold 1/B once
        return loss, vec

    kernel = functools.partial(_kernel_loss_only, batch=B, tile_rows=TB)
    part = pl.pallas_call(
        kernel,
        out_shape=part_shape,
        grid=grid,
        in_specs=in_specs,
        out_specs=part_spec,
        compiler_params=params,
        cost_estimate=cost,
    )(inputs, targets)
    return jnp.sum(part) / B, None


def _reference(inputs, targets):
    log_probs = jax.nn.log_softmax(inputs, axis=1)
    p = jax.nn.softmax(targets, axis=1)
    vec = -p * log_probs
    return jnp.sum(vec) / inputs.shape[0], vec


if __name__ == "__main__":
    key = jax.random.PRNGKey(0)

    # Small shapes consistent with the module: (batch, num_classes) logits.
    B, C = 8, 16
    k1, k2 = jax.random.split(key)
    inputs = jax.random.normal(k1, (B, C), dtype=jnp.float32)
    targets = jax.random.normal(k2, (B, C), dtype=jnp.float32)

    loss, loss_vec = soft_entropy_loss({"prob": inputs}, {"prob": targets})
    loss = jax.block_until_ready(loss)
    loss_vec = jax.block_until_ready(loss_vec)

    ref_loss, ref_vec = _reference(inputs, targets)
    assert loss_vec.shape == (B, C)
    assert jnp.allclose(loss, ref_loss, atol=1e-4, rtol=1e-4), (loss, ref_loss)
    assert jnp.allclose(loss_vec, ref_vec, atol=1e-4, rtol=1e-4)

    # Ragged shapes (B % 8 != 0, C % 128 != 0): exercises partial-block
    # handling + in-kernel row masking (no jnp.pad / slicing round-trips).
    B2, C2 = 13, 200
    k3, k4 = jax.random.split(k2)
    inp2 = jax.random.normal(k3, (B2, C2), dtype=jnp.float32)
    tgt2 = jax.random.normal(k4, (B2, C2), dtype=jnp.float32)
    loss2, vec2 = soft_entropy_loss({"prob": inp2}, {"prob": tgt2})
    loss2 = jax.block_until_ready(loss2)
    vec2 = jax.block_until_ready(vec2)
    ref_loss2, ref_vec2 = _reference(inp2, tgt2)
    assert vec2.shape == (B2, C2)
    assert jnp.allclose(loss2, ref_loss2, atol=1e-4, rtol=1e-4), (loss2, ref_loss2)
    assert jnp.allclose(vec2, ref_vec2, atol=1e-4, rtol=1e-4)

    # Scalar-only path: drops the (B, C) loss_vec writeback entirely.
    loss3, _ = soft_entropy_loss({"prob": inputs}, {"prob": targets},
                                 compute_loss_vec=False)
    loss3 = jax.block_until_ready(loss3)
    assert jnp.allclose(loss3, ref_loss, atol=1e-4, rtol=1e-4), (loss3, ref_loss)

    print("KERNEL_OK")
</pallas_src>

<mosaic_0001>
module attributes {stable_mosaic.version = 11 : i64} {
  func.func @_kernel_with_vec(%arg0: i32, %arg1: memref<8x16xf32, #tpu.memory_space<vmem>>, %arg2: memref<8x16xf32, #tpu.memory_space<vmem>>, %arg3: memref<8x16xf32, #tpu.memory_space<vmem>>, %arg4: memref<1x1x16xf32, #tpu.memory_space<vmem>>) attributes {dimension_semantics = [#tpu.dimension_semantics<parallel>], iteration_bounds = array<i64: 1>, scalar_prefetch = 0 : i64, scratch_operands = 0 : i64, tpu.core_type = #tpu.core_type<tc>, window_params = [{transform_indices = @transform_0, window_bounds = array<i64: 8, 16>}, {transform_indices = @transform_1, window_bounds = array<i64: 8, 16>}, {transform_indices = @transform_2, window_bounds = array<i64: 8, 16>}, {transform_indices = @transform_3, window_bounds = array<i64: 1, 1, 16>}]} {
    %c0 = arith.constant 0 : index
    %c0_0 = arith.constant 0 : index
    %0 = vector.load %arg1[%c0, %c0_0] : memref<8x16xf32, #tpu.memory_space<vmem>>, vector<8x16xf32>
    %c0_1 = arith.constant 0 : index
    %c0_2 = arith.constant 0 : index
    %1 = vector.load %arg2[%c0_1, %c0_2] : memref<8x16xf32, #tpu.memory_space<vmem>>, vector<8x16xf32>
    %cst = arith.constant dense<0xFF800000> : vector<8xf32>
    %2 = vector.multi_reduction <maximumf>, %0, %cst [1] : vector<8x16xf32> to vector<8xf32>
    %3 = vector.shape_cast %2 : vector<8xf32> to vector<8x1xf32>
    %4 = vector.broadcast %3 : vector<8x1xf32> to vector<8x16xf32>
    %5 = arith.subf %0, %4 : vector<8x16xf32>
    %6 = math.exp %5 : vector<8x16xf32>
    %cst_3 = arith.constant dense<0.000000e+00> : vector<8xf32>
    %7 = vector.multi_reduction <add>, %6, %cst_3 [1] : vector<8x16xf32> to vector<8xf32>
    %8 = vector.shape_cast %7 : vector<8xf32> to vector<8x1xf32>
    %9 = math.log %8 : vector<8x1xf32>
    %10 = vector.broadcast %9 : vector<8x1xf32> to vector<8x16xf32>
    %11 = arith.subf %5, %10 : vector<8x16xf32>
    %cst_4 = arith.constant dense<0xFF800000> : vector<8xf32>
    %12 = vector.multi_reduction <maximumf>, %1, %cst_4 [1] : vector<8x16xf32> to vector<8xf32>
    %13 = vector.shape_cast %12 : vector<8xf32> to vector<8x1xf32>
    %14 = vector.broadcast %13 : vector<8x1xf32> to vector<8x16xf32>
    %15 = arith.subf %1, %14 : vector<8x16xf32>
    %16 = math.exp %15 : vector<8x16xf32>
    %cst_5 = arith.constant dense<0.000000e+00> : vector<8xf32>
    %17 = vector.multi_reduction <add>, %16, %cst_5 [1] : vector<8x16xf32> to vector<8xf32>
    %18 = vector.shape_cast %17 : vector<8xf32> to vector<8x1xf32>
    %19 = vector.broadcast %18 : vector<8x1xf32> to vector<8x16xf32>
    %20 = arith.divf %16, %19 : vector<8x16xf32>
    %cst_6 = arith.constant 0.000000e+00 : f32
    %21 = vector.broadcast %cst_6 : f32 to vector<8x16xf32>
    %22 = arith.subf %21, %20 : vector<8x16xf32>
    %23 = arith.mulf %22, %11 : vector<8x16xf32>
    %c8_i32 = arith.constant 8 : i32
    %24 = arith.muli %arg0, %c8_i32 : i32
    %25 = tpu.iota {dimensions = array<i32: 0>} : vector<8x16xi32>
    %26 = vector.broadcast %24 : i32 to vector<8x16xi32>
    %27 = arith.addi %26, %25 : vector<8x16xi32>
    %c8_i32_7 = arith.constant 8 : i32
    %28 = vector.broadcast %c8_i32_7 : i32 to vector<8x16xi32>
    %29 = arith.cmpi slt, %27, %28 : vector<8x16xi32>
    %cst_8 = arith.constant 0.000000e+00 : f32
    %30 = vector.broadcast %cst_8 : f32 to vector<8x16xf32>
    %31 = arith.select %29, %23, %30 : vector<8x16xi1>, vector<8x16xf32>
    %cst_9 = arith.constant dense<0.000000e+00> : vector<16xf32>
    %32 = vector.multi_reduction <add>, %31, %cst_9 [0] : vector<8x16xf32> to vector<16xf32>
    %33 = vector.shape_cast %32 : vector<16xf32> to vector<1x16xf32>
    %c0_10 = arith.constant 0 : index
    %c0_11 = arith.constant 0 : index
    %34 = vector.load %arg3[%c0_10, %c0_11] : memref<8x16xf32, #tpu.memory_space<vmem>>, vector<8x16xf32>
    tpu.vector_store %arg3[%c0_10, %c0_11], %23 {strides = array<i32>} : memref<8x16xf32, #tpu.memory_space<vmem>>, vector<8x16xf32>,
    %35 = vector.shape_cast %33 : vector<1x16xf32> to vector<1x1x16xf32>
    %c0_12 = arith.constant 0 : index
    %c0_13 = arith.constant 0 : index
    %c0_14 = arith.constant 0 : index
    %36 = vector.load %arg4[%c0_12, %c0_13, %c0_14] : memref<1x1x16xf32, #tpu.memory_space<vmem>>, vector<1x1x16xf32>
    tpu.vector_store %arg4[%c0_12, %c0_13, %c0_14], %35 {strides = array<i32>} : memref<1x1x16xf32, #tpu.memory_space<vmem>>, vector<1x1x16xf32>,
    return
  }
  func.func @transform_0(%arg0: i32) -> (i32, i32) {
    %c0_i32 = arith.constant 0 : i32
    %c0_i32_0 = arith.constant 0 : i32
    return %arg0, %c0_i32 : i32, i32
  }
  func.func @transform_1(%arg0: i32) -> (i32, i32) {
    %c0_i32 = arith.constant 0 : i32
    %c0_i32_0 = arith.constant 0 : i32
    return %arg0, %c0_i32 : i32, i32
  }
  func.func @transform_2(%arg0: i32) -> (i32, i32) {
    %c0_i32 = arith.constant 0 : i32
    %c0_i32_0 = arith.constant 0 : i32
    return %arg0, %c0_i32 : i32, i32
  }
  func.func @transform_3(%arg0: i32) -> (i32, i32, i32) {
    %c0_i32 = arith.constant 0 : i32
    %c0_i32_0 = arith.constant 0 : i32
    %c0_i32_1 = arith.constant 0 : i32
    return %arg0, %c0_i32, %c0_i32_0 : i32, i32, i32
  }
}

</mosaic_0001>

<bundles_post_ra>
// kernel: tpu_custom_call.1
= control target key start
LH: loop header
LB: loop body
LE: loop exit
PB: predicated region body
PF: predicated region fallthrough
CT: control target
= control target key end

     0   :  { %9 = vsyncpa [#allocation3], 0  ;;  %s300_s0 = inlined_call_operand.hbm [shape: f32[8,16], index: 0, kind: input, shape index: {}]   ;;  %s301_s1 = inlined_call_operand.hbm [shape: f32[8,16], index: 1, kind: input, shape index: {}]   ;;  %s302_s2 = inlined_call_operand.hbm [shape: f32[8,16], index: 2, kind: output, shape index: {0}]   ;;  %s303_s3 = inlined_call_operand.hbm [shape: f32[1,1,16], index: 3, kind: output, shape index: {1}]  }
   0x1   :  { %10 = vsyncpa [#allocation6], 0 }
   0x2   :  { %11 = vsyncpa [#allocation4], 0 }
   0x3   :  { %12 = vsyncpa [#allocation9], 0  ;;  %s222_s12 = smov [#allocation2]   ;;  %s223_s14 = smov [#allocation5]  }
   0x4   :  { %s19_s13 = sshll.u32 %s222_s12, 4  ;;  %s29_s15 = sshll.u32 %s223_s14, 4  ;;  %s20_s13 = int_to_ptr.vmem [resolvable:$true] %s19_s13  ;;  %s30_s15 = int_to_ptr.vmem [resolvable:$true] %s29_s15 }
   0x5   :  { %s126_s18 = scalar_lea.hbm %s300_s0, 128 }
   0x6   :  { %p127_p0 = scmp.ne.s32.totalorder %s300_s0, %s126_s18  ;;  %p130_p1 = scmp.lt.u32.totalorder %s126_s18, %s300_s0 }
   0x8   :  { %p132_p2 = pnand %p130_p1, %p127_p0 }
   0xa   :  { %135 = shalt.err (!%p132_p2)
}
   0xb   :  { %s136_s23 = scalar_lea.vmem %s20_s13, 128  ;;  %p141_p4 = scmp.lt.s32.totalorder %s20_s13, %s20_s13 }
   0xc   :  { %p137_p3 = scmp.ne.s32.totalorder %s20_s13, %s136_s23  ;;  %p142_p5 = scmp.lt.s32.totalorder %s136_s23, %s136_s23 }
   0xe   :  { %p143_p6 = por %p142_p5, %p141_p4 }
  0x10   :  { %p144_p7 = pnand %p143_p6, %p137_p3 }
  0x12   :  { %147 = shalt.err (!%p144_p7)
}
  0x13   :  { %22 = dma.hbm_to_vmem [thread:$0]  %s300_s0, 128, %s20_s13, [#allocation3]  }
  0x14   :  { %s148_s28 = scalar_lea.hbm %s301_s1, 128 }
  0x15   :  { %p149_p8 = scmp.ne.s32.totalorder %s301_s1, %s148_s28  ;;  %p152_p9 = scmp.lt.u32.totalorder %s148_s28, %s301_s1 }
  0x17   :  { %p154_p10 = pnand %p152_p9, %p149_p8 }
  0x19   :  { %157 = shalt.err (!%p154_p10)
}
  0x1a   :  { %s158_s6 = scalar_lea.vmem %s30_s15, 128  ;;  %p163_p12 = scmp.lt.s32.totalorder %s30_s15, %s30_s15 }
  0x1b   :  { %p159_p11 = scmp.ne.s32.totalorder %s30_s15, %s158_s6  ;;  %p164_p13 = scmp.lt.s32.totalorder %s158_s6, %s158_s6 }
  0x1d   :  { %p165_p0 = por %p164_p13, %p163_p12 }
  0x1f   :  { %p166_p1 = pnand %p165_p0, %p159_p11 }
  0x21   :  { %169 = shalt.err (!%p166_p1)
}
  0x22   :  { %32 = dma.hbm_to_vmem [thread:$0]  %s301_s1, 128, %s30_s15, [#allocation6]  }
  0x23   :  { %214 = dma.done.wait [#allocation3], 128  }
  0x24   :  { %215 = vsyncadd [#allocation3], 4294967168 }
  0x25   :  { %216 = dma.done.wait [#allocation6], 128  }
  0x26   :  { %217 = vsyncadd [#allocation6], 4294967168  ;;  %vm41_vm0 = vcmask 130048   ;;  %v39_v0 = vld [vmem:[#allocation2] sm:$0xff]  ;;  %v40_v1 = vld [vmem:[#allocation5] sm:$0xff]  ;;  %s224_s1 = smov [#allocation7]  }
  0x27   :  { %v42_v2 = vsel %vm41_vm0, %v39_v0, -inf  ;;  %v54_v3 = vsel %vm41_vm0, %v40_v1, -inf  ;;  %s90_s8 = sshll.u32 %s224_s1, 4  ;;  %s91_s8 = int_to_ptr.vmem [resolvable:$true] %s90_s8 }
  0x28   :  { %43 = vmax.xlane.f32.xlu0 %v42_v2  ;;  %s170_s9 = scalar_lea.vmem %s91_s8, 128  ;;  %p175_p3 = scmp.lt.s32.totalorder %s91_s8, %s91_s8 }
  0x29   :  { %p171_p2 = scmp.ne.s32.totalorder %s91_s8, %s170_s9  ;;  %p176_p4 = scmp.lt.s32.totalorder %s170_s9, %s170_s9 }
  0x2b   :  { %p177_p5 = por %p176_p4, %p175_p3 }
  0x2c   :  { %55 = vmax.xlane.f32.xlu0 %v54_v3 }
  0x2d   :  { %p178_p6 = pnand %p177_p5, %p171_p2 }
  0xb5   :  { %v44_v4 = vpop.xlane.xlu0 %43 }
  0xb6   :  { %v45_v5 = vsub.f32 %v39_v0, %v44_v4 }
  0xb8   :  { %v46_v6 = vmul.f32 1.442695, %v45_v5 }
  0xb9   :  { %v56_v7 = vpop.xlane.xlu0 %55 }
  0xba   :  { %118 = vpow2.f32 %v46_v6  ;;  %v57_v8 = vsub.f32 %v40_v1, %v56_v7 }
  0xbc   :  { %v58_v9 = vmul.f32 1.442695, %v57_v8 }
  0xbe   :  { %120 = vpow2.f32 %v58_v9 }
  0xc4   :  { %v119_v10 = vpop.eup %118 }
  0xc5   :  { %v48_v11 = vsel %vm41_vm0, %v119_v10, 0.0 }
  0xc6   :  { %49 = vadd.xlane.f32.xlu1 %v48_v11 }
  0xc8   :  { %v121_v12 = vpop.eup %120 }
  0xc9   :  { %v60_v13 = vsel %vm41_vm0, %v121_v12, 0.0 }
  0xca   :  { %61 = vadd.xlane.f32.xlu1 %v60_v13 }
 0x153   :  { %v50_v14 = vpop.xlane.xlu1 %49 }
 0x154   :  { %122 = vlog2.f32 %v50_v14 }
 0x157   :  { %v62_v15 = vpop.xlane.xlu1 %61 }
 0x158   :  { %124 = vrcp.f32 %v62_v15 }
 0x15e   :  { %v123_v16 = vpop.eup %122 }
 0x15f   :  { %v52_v17 = vmul.f32 0.6931472, %v123_v16 }
 0x161   :  { %v53_v20 = vsub.f32 %v45_v5, %v52_v17 }
 0x162   :  { %v125_v18 = vpop.eup %124 }
 0x163   :  { %v64_v19 = vmul.f32 %v125_v18, %v121_v12 }
 0x165   :  { %v65_v21 = vsub.f32 0.0, %v64_v19 }
 0x167   :  { %v66_v22 = vmul.f32 %v65_v21, %v53_v20 }
 0x169   :  { %v74_v23 = vsel %vm41_vm0, %v66_v22, 0.0  ;;  %81 = vst.msk [vmem:[#allocation7] sm:$0xff] %vm41_vm0, %v66_v22 }
 0x16a   :  { %v75_v24 = vrot.slane %v74_v23, 4 }
 0x16b   :  { %181 = shalt.err (!%p178_p6)
}
 0x16c   :  { %s182_s12 = scalar_lea.hbm %s302_s2, 128 }
 0x16d   :  { %p183_p7 = scmp.ne.s32.totalorder %s302_s2, %s182_s12  ;;  %p186_p8 = scmp.lt.u32.totalorder %s182_s12, %s302_s2 }
 0x16f   :  { %p188_p9 = pnand %p186_p8, %p183_p7 }
 0x171   :  { %191 = shalt.err (!%p188_p9)
}
 0x172   :  { %93 = dma.vmem_to_hbm [thread:$0]  %s91_s8, 128, %s302_s2, [#allocation4]   ;;  %v76_v25 = vadd.f32 %v75_v24, %v74_v23  ;;  %vm82_vm1 = vcmask 122880  }
 0x173   :  { %s225_s19 = smov [#allocation8]  }
 0x174   :  { %v77_v26 = vrot.slane %v76_v25, 2  ;;  %s100_s20 = sshll.u32 %s225_s19, 4  ;;  %s101_s20 = int_to_ptr.vmem [resolvable:$true] %s100_s20 }
 0x175   :  { %s192_s21 = scalar_lea.vmem %s101_s20, 16  ;;  %s196_s22 = scalar_lea.vmem %s101_s20, 32 }
 0x176   :  { %v78_v27 = vadd.f32 %v77_v26, %v76_v25  ;;  %p193_p10 = scmp.ne.s32.totalorder %s101_s20, %s192_s21  ;;  %p197_p11 = scmp.lt.s32.totalorder %s101_s20, %s101_s20 }
 0x177   :  { %p198_p12 = scmp.lt.s32.totalorder %s196_s22, %s192_s21 }
 0x178   :  { %v79_v28 = vrot.slane %v78_v27, 1 }
 0x179   :  { %p199_p13 = por %p198_p12, %p197_p11 }
 0x17a   :  { %v80_v29 = vadd.f32 %v79_v28, %v78_v27 }
 0x17b   :  { %p200_p0 = pnand %p199_p13, %p193_p10 }
 0x17c   :  { %83 = vst.msk [vmem:[#allocation8] sm:$0x1] %vm82_vm1, %v80_v29 }
 0x17d   :  { %203 = shalt.err (!%p200_p0)
}
 0x17e   :  { %s204_s24 = scalar_lea.hbm %s303_s3, 16 }
 0x17f   :  { %p205_p1 = scmp.ne.s32.totalorder %s303_s3, %s204_s24  ;;  %p208_p2 = scmp.lt.u32.totalorder %s204_s24, %s303_s3 }
 0x181   :  { %p210_p3 = pnand %p208_p2, %p205_p1 }
 0x183   :  { %213 = shalt.err (!%p210_p3)
}
 0x184   :  { %103 = dma.vmem_to_hbm [thread:$0]  %s101_s20, 16, %s303_s3, [#allocation9]  }
 0x185   :  { %218 = dma.done.wait [#allocation4], 128  }
 0x186   :  { %219 = vsyncadd [#allocation4], 4294967168 }
 0x187   :  { %220 = dma.done.wait [#allocation9], 16  }
 0x188   :  { %221 = vsyncadd [#allocation9], 4294967280 }
 0x189   :  { %110 = vsyncpa [#allocation3], 1 }
 0x18a   :  { %111 = vsyncpa [#allocation6], 1 }
 0x18b   :  { %112 = vsyncpa [#allocation4], 1 }
 0x18c   :  { %113 = vsyncpa [#allocation9], 1 }

</bundles_post_ra>
